<compile_context>
chip_gen: v6e
topology: v6e:2x2x1
jax: 0.10.0
libtpu: 0.0.40
codegen_flags: <defaults>
</compile_context>

<pallas_src>
import functools

import jax
import jax.numpy as jnp
from jax.experimental import pallas as pl
from jax.experimental.pallas import tpu as pltpu

_LANE = 128  # TPU vreg lane width


def _round_up(v, m):
    return (v + m - 1) // m * m


# --------------------------------------------------------------------------- #
# Kernel
# --------------------------------------------------------------------------- #
def _decoder_kernel(inp_ref, w_phi_ref, b_phi_ref, w_cat_ref, b_cat_ref,
                    eps_ref, x_ref, mean_ref, std_ref, *, x_dim):
    # ---- stage 1: z = ReLU(inp @ W_phi + b_phi), lane-dense (h padded) ------
    wt1 = w_phi_ref.dtype
    z = jnp.maximum(
        jnp.dot(inp_ref[...].astype(wt1), w_phi_ref[...],
                preferred_element_type=jnp.float32) + b_phi_ref[...],
        0.0)

    # ---- stage 2 (fused): one MXU push yields mean & std pre-activations ----
    wt2 = w_cat_ref.dtype
    ms = jnp.dot(z.astype(wt2), w_cat_ref[...],
                 preferred_element_type=jnp.float32) + b_cat_ref[...]
    m_pre = ms[:, :x_dim]
    s_pre = ms[:, x_dim:]

    # sigmoid via a single EUP tanh:  sigmoid(x) = 0.5*tanh(0.5*x) + 0.5
    x_mean = 0.5 * jnp.tanh(0.5 * m_pre) + 0.5
    # numerically stable softplus (matches jax.nn.softplus)
    x_std = jnp.maximum(s_pre, 0.0) + jnp.log1p(jnp.exp(-jnp.abs(s_pre)))
    # reparameterized sample
    x = eps_ref[...] * x_std + x_mean

    # direct stores, no packed temporary
    x_ref[...] = x
    mean_ref[...] = x_mean
    std_ref[...] = x_std


# --------------------------------------------------------------------------- #
# One-time parameter packing (fused W_cat, h_dim padded to 128 lanes)
# --------------------------------------------------------------------------- #
def pack_decoder_params(params, *, matmul_dtype=jnp.float32):
    """Fuse/pad the decoder weights once (call outside the hot loop)."""
    z_dim, h_dim = params["w_phi"].shape
    x_dim = params["w_mean"].shape[1]
    hp = _round_up(h_dim, _LANE)

    w_phi = jnp.zeros((z_dim, hp), matmul_dtype)
    w_phi = w_phi.at[:, :h_dim].set(params["w_phi"].astype(matmul_dtype))
    b_phi = jnp.zeros((1, hp), jnp.float32).at[:, :h_dim].set(params["b_phi"])

    w_cat = jnp.zeros((hp, 2 * x_dim), matmul_dtype)
    w_cat = w_cat.at[:h_dim, :x_dim].set(params["w_mean"].astype(matmul_dtype))
    w_cat = w_cat.at[:h_dim, x_dim:].set(params["w_std"].astype(matmul_dtype))
    b_cat = jnp.concatenate(
        [params["b_mean"], params["b_std"]], axis=-1).astype(jnp.float32)

    return {
        "w_phi": w_phi, "b_phi": b_phi, "w_cat": w_cat, "b_cat": b_cat,
        "x_dim": int(x_dim), "h_dim": int(h_dim), "z_dim": int(z_dim),
    }


# --------------------------------------------------------------------------- #
# Forward wrapper
# --------------------------------------------------------------------------- #
def decoder_forward(inp, packed, eps, *, batch_tile=2048,
                    tile_vmem_budget_bytes=24 * 1024 * 1024):
    """Runs the fused Decoder forward Pallas kernel.

    inp:    (B, z_dim) float32
    packed: output of pack_decoder_params(params)
    eps:    (B, x_dim) float32, standard-normal noise
    returns (x, x_mean, x_std), each (B, x_dim) float32
    """
    B, z_dim = inp.shape
    x_dim = packed["x_dim"]
    hp = packed["w_phi"].shape[1]
    assert z_dim == packed["z_dim"]
    assert eps.shape == (B, x_dim)

    # Resident weight bytes (default double-buffered by the pipeline).
    wbytes = 2 * int(
        packed["w_phi"].size * packed["w_phi"].dtype.itemsize
        + packed["b_phi"].size * 4
        + packed["w_cat"].size * packed["w_cat"].dtype.itemsize
        + packed["b_cat"].size * 4)
    # Per-row f32 bytes of the streamed tiles: inp + eps + 3 outputs.
    row_bytes = 4 * (z_dim + 4 * x_dim)
    # VMEM-aware batch-tile cap (keeps v7x's 64 MiB / 32 MiB scoped happy).
    tb_cap = (tile_vmem_budget_bytes - wbytes) // (2 * row_bytes)
    tb = min(batch_tile, tb_cap, _round_up(B, 8))
    tb = max(8, (tb // 8) * 8)          # force multiple of 8 sublanes

    bp = _round_up(B, tb)
    if bp != B:                          # pad only a ragged tail (rare)
        inp = jnp.pad(inp, ((0, bp - B), (0, 0)))
        eps = jnp.pad(eps, ((0, bp - B), (0, 0)))

    grid = (bp // tb,)

    flops = 2 * bp * (z_dim * hp + hp * 2 * x_dim)
    transcendentals = 3 * bp * x_dim
    bytes_accessed = (4 * bp * (z_dim + x_dim + 3 * x_dim)) + wbytes // 2

    out = pl.pallas_call(
        functools.partial(_decoder_kernel, x_dim=x_dim),
        out_shape=(
            jax.ShapeDtypeStruct((bp, x_dim), jnp.float32),   # x
            jax.ShapeDtypeStruct((bp, x_dim), jnp.float32),   # x_mean
            jax.ShapeDtypeStruct((bp, x_dim), jnp.float32),   # x_std
        ),
        grid_spec=pltpu.PrefetchScalarGridSpec(
            num_scalar_prefetch=0,
            grid=grid,
            in_specs=[
                pl.BlockSpec((tb, z_dim), lambda i: (i, 0)),        # inp tile
                pl.BlockSpec((z_dim, hp), lambda i: (0, 0)),        # W_phi (resident)
                pl.BlockSpec((1, hp), lambda i: (0, 0)),            # b_phi (resident)
                pl.BlockSpec((hp, 2 * x_dim), lambda i: (0, 0)),    # W_cat (resident)
                pl.BlockSpec((1, 2 * x_dim), lambda i: (0, 0)),     # b_cat (resident)
                pl.BlockSpec((tb, x_dim), lambda i: (i, 0)),        # eps tile
            ],
            out_specs=[
                pl.BlockSpec((tb, x_dim), lambda i: (i, 0)),
                pl.BlockSpec((tb, x_dim), lambda i: (i, 0)),
                pl.BlockSpec((tb, x_dim), lambda i: (i, 0)),
            ],
        ),
        compiler_params=pltpu.CompilerParams(
            dimension_semantics=("parallel",),
            vmem_limit_bytes=32 * 1024 * 1024,
        ),
        cost_estimate=pl.CostEstimate(
            flops=flops,
            transcendentals=transcendentals,
            bytes_accessed=bytes_accessed,
        ),
    )(inp, packed["w_phi"], packed["b_phi"], packed["w_cat"], packed["b_cat"],
      eps)

    x, x_mean, x_std = out
    if bp != B:
        x, x_mean, x_std = x[:B], x_mean[:B], x_std[:B]
    return x, x_mean, x_std


# --------------------------------------------------------------------------- #
# Init / reference / demo
# --------------------------------------------------------------------------- #
def init_params(key, x_dim, h_dim, z_dim):
    """Deterministic PyTorch-Linear-style init: U(-1/sqrt(fan_in), 1/sqrt(fan_in))."""
    ks = jax.random.split(key, 6)

    def lin(kw, kb, fan_in, fan_out):
        bound = 1.0 / jnp.sqrt(fan_in)
        w = jax.random.uniform(kw, (fan_in, fan_out), jnp.float32, -bound, bound)
        b = jax.random.uniform(kb, (1, fan_out), jnp.float32, -bound, bound)
        return w, b

    w_phi, b_phi = lin(ks[0], ks[1], z_dim, h_dim)
    w_mean, b_mean = lin(ks[2], ks[3], h_dim, x_dim)
    w_std, b_std = lin(ks[4], ks[5], h_dim, x_dim)
    return {
        "w_phi": w_phi, "b_phi": b_phi,
        "w_mean": w_mean, "b_mean": b_mean,
        "w_std": w_std, "b_std": b_std,
    }


def _reference(inp, params, eps):
    z = jax.nn.relu(inp @ params["w_phi"] + params["b_phi"])
    x_mean = jax.nn.sigmoid(z @ params["w_mean"] + params["b_mean"])
    x_std = jax.nn.softplus(z @ params["w_std"] + params["b_std"])
    return eps * x_std + x_mean, x_mean, x_std


if __name__ == "__main__":
    # Small synthetic shapes consistent with the module: batch=8, z_dim=16,
    # h_dim=32, x_dim=16.
    B, x_dim, h_dim, z_dim = 8, 16, 32, 16

    key = jax.random.PRNGKey(0)
    k_params, k_inp, k_eps = jax.random.split(key, 3)

    params = init_params(k_params, x_dim, h_dim, z_dim)
    inp = jax.random.normal(k_inp, (B, z_dim), jnp.float32)
    # Noise for the reparameterized sample (torch uses FloatTensor.normal_()).
    # Kept as a host-side input for RNG parity; could be generated in-kernel
    # with pltpu.prng_seed/prng_random_bits to drop the largest input stream.
    eps = jax.random.normal(k_eps, (B, x_dim), jnp.float32)

    packed = pack_decoder_params(params)          # one-time weight fuse/pad
    x, x_mean, x_std = decoder_forward(inp, packed, eps)
    jax.block_until_ready((x, x_mean, x_std))

    # Sanity check against a pure-JAX reference.
    rx, rm, rs = _reference(inp, params, eps)
    assert jnp.allclose(x, rx, atol=1e-5)
    assert jnp.allclose(x_mean, rm, atol=1e-5)
    assert jnp.allclose(x_std, rs, atol=1e-5)

    print("KERNEL_OK")
</pallas_src>

<mosaic_0001>
module attributes {stable_mosaic.version = 11 : i64} {
  func.func @_decoder_kernel(%arg0: i32, %arg1: memref<8x16xf32, #tpu.memory_space<vmem>>, %arg2: memref<16x128xf32, #tpu.memory_space<vmem>>, %arg3: memref<1x128xf32, #tpu.memory_space<vmem>>, %arg4: memref<128x32xf32, #tpu.memory_space<vmem>>, %arg5: memref<1x32xf32, #tpu.memory_space<vmem>>, %arg6: memref<8x16xf32, #tpu.memory_space<vmem>>, %arg7: memref<8x16xf32, #tpu.memory_space<vmem>>, %arg8: memref<8x16xf32, #tpu.memory_space<vmem>>, %arg9: memref<8x16xf32, #tpu.memory_space<vmem>>) attributes {dimension_semantics = [#tpu.dimension_semantics<parallel>], iteration_bounds = array<i64: 1>, scalar_prefetch = 0 : i64, scratch_operands = 0 : i64, tpu.core_type = #tpu.core_type<tc>, window_params = [{transform_indices = @transform_0, window_bounds = array<i64: 8, 16>}, {pipeline_mode = #tpu.pipeline_mode<synchronous>, transform_indices = @transform_1, window_bounds = array<i64: 16, 128>}, {pipeline_mode = #tpu.pipeline_mode<synchronous>, transform_indices = @transform_2, window_bounds = array<i64: 1, 128>}, {pipeline_mode = #tpu.pipeline_mode<synchronous>, transform_indices = @transform_3, window_bounds = array<i64: 128, 32>}, {pipeline_mode = #tpu.pipeline_mode<synchronous>, transform_indices = @transform_4, window_bounds = array<i64: 1, 32>}, {transform_indices = @transform_5, window_bounds = array<i64: 8, 16>}, {transform_indices = @transform_6, window_bounds = array<i64: 8, 16>}, {transform_indices = @transform_7, window_bounds = array<i64: 8, 16>}, {transform_indices = @transform_8, window_bounds = array<i64: 8, 16>}]} {
    %c0 = arith.constant 0 : index
    %c0_0 = arith.constant 0 : index
    %0 = vector.load %arg1[%c0, %c0_0] : memref<8x16xf32, #tpu.memory_space<vmem>>, vector<8x16xf32>
    %c0_1 = arith.constant 0 : index
    %c0_2 = arith.constant 0 : index
    %1 = vector.load %arg2[%c0_1, %c0_2] : memref<16x128xf32, #tpu.memory_space<vmem>>, vector<16x128xf32>
    %cst = arith.constant dense<0.000000e+00> : vector<8x128xf32>
    %2 = tpu.matmul %0, %1, %cst {dimension_numbers = #tpu.dot_dimension_numbers<[1], [0], [0], [1], [0, 0, 1, 1], [], []>} : vector<8x16xf32>, vector<16x128xf32>, vector<8x128xf32> -> vector<8x128xf32>
    %c0_3 = arith.constant 0 : index
    %c0_4 = arith.constant 0 : index
    %3 = vector.load %arg3[%c0_3, %c0_4] : memref<1x128xf32, #tpu.memory_space<vmem>>, vector<1x128xf32>
    %4 = vector.broadcast %3 : vector<1x128xf32> to vector<8x128xf32>
    %5 = arith.addf %2, %4 : vector<8x128xf32>
    %cst_5 = arith.constant 0.000000e+00 : f32
    %6 = vector.broadcast %cst_5 : f32 to vector<8x128xf32>
    %7 = arith.maximumf %5, %6 : vector<8x128xf32>
    %c0_6 = arith.constant 0 : index
    %c0_7 = arith.constant 0 : index
    %8 = vector.load %arg4[%c0_6, %c0_7] : memref<128x32xf32, #tpu.memory_space<vmem>>, vector<128x32xf32>
    %cst_8 = arith.constant dense<0.000000e+00> : vector<8x32xf32>
    %9 = tpu.matmul %7, %8, %cst_8 {dimension_numbers = #tpu.dot_dimension_numbers<[1], [0], [0], [1], [0, 0, 1, 1], [], []>} : vector<8x128xf32>, vector<128x32xf32>, vector<8x32xf32> -> vector<8x32xf32>
    %c0_9 = arith.constant 0 : index
    %c0_10 = arith.constant 0 : index
    %10 = vector.load %arg5[%c0_9, %c0_10] : memref<1x32xf32, #tpu.memory_space<vmem>>, vector<1x32xf32>
    %11 = vector.broadcast %10 : vector<1x32xf32> to vector<8x32xf32>
    %12 = arith.addf %9, %11 : vector<8x32xf32>
    %13 = vector.extract_strided_slice %12 {offsets = [0, 0], sizes = [8, 16], strides = [1, 1]} : vector<8x32xf32> to vector<8x16xf32>
    %14 = vector.extract_strided_slice %12 {offsets = [0, 16], sizes = [8, 16], strides = [1, 1]} : vector<8x32xf32> to vector<8x16xf32>
    %cst_11 = arith.constant 5.000000e-01 : f32
    %15 = vector.broadcast %cst_11 : f32 to vector<8x16xf32>
    %16 = arith.mulf %15, %13 : vector<8x16xf32>
    %17 = math.tanh %16 : vector<8x16xf32>
    %cst_12 = arith.constant 5.000000e-01 : f32
    %18 = vector.broadcast %cst_12 : f32 to vector<8x16xf32>
    %19 = arith.mulf %18, %17 : vector<8x16xf32>
    %cst_13 = arith.constant 5.000000e-01 : f32
    %20 = vector.broadcast %cst_13 : f32 to vector<8x16xf32>
    %21 = arith.addf %19, %20 : vector<8x16xf32>
    %cst_14 = arith.constant 0.000000e+00 : f32
    %22 = vector.broadcast %cst_14 : f32 to vector<8x16xf32>
    %23 = arith.maximumf %14, %22 : vector<8x16xf32>
    %24 = math.absf %14 : vector<8x16xf32>
    %cst_15 = arith.constant 0.000000e+00 : f32
    %25 = vector.broadcast %cst_15 : f32 to vector<8x16xf32>
    %26 = arith.subf %25, %24 : vector<8x16xf32>
    %27 = math.exp %26 : vector<8x16xf32>
    %28 = math.log1p %27 : vector<8x16xf32>
    %29 = arith.addf %23, %28 : vector<8x16xf32>
    %c0_16 = arith.constant 0 : index
    %c0_17 = arith.constant 0 : index
    %30 = vector.load %arg6[%c0_16, %c0_17] : memref<8x16xf32, #tpu.memory_space<vmem>>, vector<8x16xf32>
    %31 = arith.mulf %30, %29 : vector<8x16xf32>
    %32 = arith.addf %31, %21 : vector<8x16xf32>
    %c0_18 = arith.constant 0 : index
    %c0_19 = arith.constant 0 : index
    %33 = vector.load %arg7[%c0_18, %c0_19] : memref<8x16xf32, #tpu.memory_space<vmem>>, vector<8x16xf32>
    tpu.vector_store %arg7[%c0_18, %c0_19], %32 {strides = array<i32>} : memref<8x16xf32, #tpu.memory_space<vmem>>, vector<8x16xf32>,
    %c0_20 = arith.constant 0 : index
    %c0_21 = arith.constant 0 : index
    %34 = vector.load %arg8[%c0_20, %c0_21] : memref<8x16xf32, #tpu.memory_space<vmem>>, vector<8x16xf32>
    tpu.vector_store %arg8[%c0_20, %c0_21], %21 {strides = array<i32>} : memref<8x16xf32, #tpu.memory_space<vmem>>, vector<8x16xf32>,
    %c0_22 = arith.constant 0 : index
    %c0_23 = arith.constant 0 : index
    %35 = vector.load %arg9[%c0_22, %c0_23] : memref<8x16xf32, #tpu.memory_space<vmem>>, vector<8x16xf32>
    tpu.vector_store %arg9[%c0_22, %c0_23], %29 {strides = array<i32>} : memref<8x16xf32, #tpu.memory_space<vmem>>, vector<8x16xf32>,
    return
  }
  func.func @transform_0(%arg0: i32) -> (i32, i32) {
    %c0_i32 = arith.constant 0 : i32
    %c0_i32_0 = arith.constant 0 : i32
    return %arg0, %c0_i32 : i32, i32
  }
  func.func @transform_1(%arg0: i32) -> (i32, i32) {
    %c0_i32 = arith.constant 0 : i32
    %c0_i32_0 = arith.constant 0 : i32
    %c0_i32_1 = arith.constant 0 : i32
    return %c0_i32, %c0_i32_0 : i32, i32
  }
  func.func @transform_2(%arg0: i32) -> (i32, i32) {
    %c0_i32 = arith.constant 0 : i32
    %c0_i32_0 = arith.constant 0 : i32
    %c0_i32_1 = arith.constant 0 : i32
    return %c0_i32, %c0_i32_0 : i32, i32
  }
  func.func @transform_3(%arg0: i32) -> (i32, i32) {
    %c0_i32 = arith.constant 0 : i32
    %c0_i32_0 = arith.constant 0 : i32
    %c0_i32_1 = arith.constant 0 : i32
    return %c0_i32, %c0_i32_0 : i32, i32
  }
  func.func @transform_4(%arg0: i32) -> (i32, i32) {
    %c0_i32 = arith.constant 0 : i32
    %c0_i32_0 = arith.constant 0 : i32
    %c0_i32_1 = arith.constant 0 : i32
    return %c0_i32, %c0_i32_0 : i32, i32
  }
  func.func @transform_5(%arg0: i32) -> (i32, i32) {
    %c0_i32 = arith.constant 0 : i32
    %c0_i32_0 = arith.constant 0 : i32
    return %arg0, %c0_i32 : i32, i32
  }
  func.func @transform_6(%arg0: i32) -> (i32, i32) {
    %c0_i32 = arith.constant 0 : i32
    %c0_i32_0 = arith.constant 0 : i32
    return %arg0, %c0_i32 : i32, i32
  }
  func.func @transform_7(%arg0: i32) -> (i32, i32) {
    %c0_i32 = arith.constant 0 : i32
    %c0_i32_0 = arith.constant 0 : i32
    return %arg0, %c0_i32 : i32, i32
  }
  func.func @transform_8(%arg0: i32) -> (i32, i32) {
    %c0_i32 = arith.constant 0 : i32
    %c0_i32_0 = arith.constant 0 : i32
    return %arg0, %c0_i32 : i32, i32
  }
}

</mosaic_0001>

<bundles_post_ra>
// kernel: tpu_custom_call.1
= control target key start
LH: loop header
LB: loop body
LE: loop exit
PB: predicated region body
PF: predicated region fallthrough
CT: control target
= control target key end

     0   :  { %14 = vsyncpa [#allocation3], 0  ;;  %v417_v1 = vmov 0.0   ;;  %vm418_vm0 = vmmov 0   ;;  %vm38_vm1 = vcmask 130048   ;;  %s549_s0 = inlined_call_operand.vmem [shape: f32[8,16], index: 0, kind: input, shape index: {}]   ;;  %s550_s1 = inlined_call_operand.vmem [shape: f32[16,128], index: 1, kind: input, shape index: {}]   ;;  %s551_s2 = inlined_call_operand.vmem [shape: f32[1,128], index: 2, kind: input, shape index: {}]   ;;  %s552_s3 = inlined_call_operand.vmem [shape: f32[128,32], index: 3, kind: input, shape index: {}]   ;;  %s553_s4 = inlined_call_operand.vmem [shape: f32[1,32], index: 4, kind: input, shape index: {}]   ;;  %s554_s5 = inlined_call_operand.vmem [shape: f32[8,16], index: 5, kind: input, shape index: {}]   ;;  %s555_s6 = inlined_call_operand.hbm [shape: f32[8,16], index: 6, kind: output, shape index: {0}]   ;;  %s556_s7 = inlined_call_operand.hbm [shape: f32[8,16], index: 7, kind: output, shape index: {1}]   ;;  %s557_s8 = inlined_call_operand.hbm [shape: f32[8,16], index: 8, kind: output, shape index: {2}]  }
   0x1   :  { %v30_v0 = vld [vmem:[%s550_s1 + $0x8] sm:$0xff]  ;;  %299 = vmatprep.subr.mxu0 %v417_v1  ;;  %v29_v2 = vld [vmem:[%s550_s1] sm:$0xff]  ;;  %303 = vmatprep.mubr.msk.f32.mxu0 %vm418_vm0, %v417_v1  ;;  %v128_v3 = vld [vmem:[%s552_s3 + $0x78] sm:$0xff] }
   0x2   :  { %300 = vmatpush3.msra.mxu0 %v30_v0  ;;  %v28_v4 = vld [vmem:[%s549_s0] sm:$0xff]  ;;  %306 = vmatprep.subr.mxu1 %v417_v1  ;;  %v127_v5 = vld [vmem:[%s552_s3 + $0x70] sm:$0xff]  ;;  %v126_v6 = vld [vmem:[%s552_s3 + $0x68] sm:$0xff] }
   0x3   :  { %301 = vmatprep.subr.mxu0 %v417_v1  ;;  %307 = vmatpush3.msra.mxu1 %v128_v3 }
   0x4   :  { %302 = vmatpush3.msra.mxu0 %v29_v2  ;;  %308 = vmatprep.subr.mxu1 %v417_v1 }
   0x5   :  { %304 = vmatmul.mubr.msk.f32.vlgmr.msra.gmra.mxu0 %vm38_vm1, %v28_v4  ;;  %309 = vmatpush3.msra.mxu1 %v127_v5 }
   0x6   :  { %15 = vsyncpa [#allocation5], 0  ;;  %310 = vmatprep.subr.mxu1 %v417_v1  ;;  %v125_v7 = vld [vmem:[%s552_s3 + $0x60] sm:$0xff]  ;;  %338 = vmatprep.mubr.msk.f32.mxu1 %vm418_vm0, %v417_v1  ;;  %v124_v8 = vld [vmem:[%s552_s3 + $0x58] sm:$0xff] }
   0x7   :  { %311 = vmatpush3.msra.mxu1 %v126_v6  ;;  %v123_v9 = vld [vmem:[%s552_s3 + $0x50] sm:$0xff]  ;;  %v122_v10 = vld [vmem:[%s552_s3 + $0x48] sm:$0xff]  ;;  %v121_v11 = vld [vmem:[%s552_s3 + $0x40] sm:$0xff] }
   0x8   :  { %312 = vmatprep.subr.mxu1 %v417_v1  ;;  %v120_v12 = vld [vmem:[%s552_s3 + $0x38] sm:$0xff]  ;;  %v119_v13 = vld [vmem:[%s552_s3 + $0x30] sm:$0xff]  ;;  %v118_v14 = vld [vmem:[%s552_s3 + $0x28] sm:$0xff] }
   0x9   :  { %313 = vmatpush3.msra.mxu1 %v125_v7  ;;  %v117_v15 = vld [vmem:[%s552_s3 + $0x20] sm:$0xff]  ;;  %v116_v16 = vld [vmem:[%s552_s3 + $0x18] sm:$0xff]  ;;  %v115_v17 = vld [vmem:[%s552_s3 + $0x10] sm:$0xff] }
   0xa   :  { %314 = vmatprep.subr.mxu1 %v417_v1  ;;  %v114_v18 = vld [vmem:[%s552_s3 + $0x8] sm:$0xff]  ;;  %v113_v19 = vld [vmem:[%s552_s3] sm:$0xff] }
   0xb   :  { %315 = vmatpush3.msra.mxu1 %v124_v8  ;;  %v276_v20 = vld [vmem:[%s551_s2] ss:$0 sm:$0xff]  ;;  %s419_s2 = smov [#allocation4]  }
   0xc   :  { %316 = vmatprep.subr.mxu1 %v417_v1  ;;  %v278_v25 = vld [vmem:[%s553_s4] ss:$0 sm:$0xff]  ;;  %s251_s3 = sshll.u32 %s419_s2, 4  ;;  %s252_s3 = int_to_ptr.vmem [resolvable:$true] %s251_s3 }
   0xd   :  { %317 = vmatpush3.msra.mxu1 %v123_v9  ;;  %s353_s4 = scalar_lea.vmem %s252_s3, 128  ;;  %p358_p1 = scmp.lt.s32.totalorder %s252_s3, %s252_s3 }
   0xe   :  { %318 = vmatprep.subr.mxu1 %v417_v1  ;;  %p354_p0 = scmp.ne.s32.totalorder %s252_s3, %s353_s4  ;;  %p359_p2 = scmp.lt.s32.totalorder %s353_s4, %s353_s4 }
   0xf   :  { %319 = vmatpush3.msra.mxu1 %v122_v10 }
  0x10   :  { %320 = vmatprep.subr.mxu1 %v417_v1  ;;  %p360_p3 = por %p359_p2, %p358_p1 }
  0x11   :  { %321 = vmatpush3.msra.mxu1 %v121_v11 }
  0x12   :  { %322 = vmatprep.subr.mxu1 %v417_v1  ;;  %p361_p4 = pnand %p360_p3, %p354_p0 }
  0x13   :  { %323 = vmatpush3.msra.mxu1 %v120_v12 }
  0x14   :  { %324 = vmatprep.subr.mxu1 %v417_v1 }
  0x15   :  { %325 = vmatpush3.msra.mxu1 %v119_v13 }
  0x16   :  { %326 = vmatprep.subr.mxu1 %v417_v1 }
  0x17   :  { %327 = vmatpush3.msra.mxu1 %v118_v14 }
  0x18   :  { %328 = vmatprep.subr.mxu1 %v417_v1 }
  0x19   :  { %329 = vmatpush3.msra.mxu1 %v117_v15 }
  0x1a   :  { %330 = vmatprep.subr.mxu1 %v417_v1 }
  0x1b   :  { %331 = vmatpush3.msra.mxu1 %v116_v16 }
  0x1c   :  { %332 = vmatprep.subr.mxu1 %v417_v1 }
  0x1d   :  { %333 = vmatpush3.msra.mxu1 %v115_v17 }
  0x1e   :  { %334 = vmatprep.subr.mxu1 %v417_v1 }
  0x1f   :  { %335 = vmatpush3.msra.mxu1 %v114_v18 }
  0x20   :  { %336 = vmatprep.subr.mxu1 %v417_v1 }
  0x21   :  { %337 = vmatpush3.msra.mxu1 %v113_v19 }
  0xc5   :  { %v108_v21 = vpop.f32.mrf.mxu0 }
  0xc6   :  { %v109_v22 = vadd.f32 %v276_v20, %v108_v21 }
  0xc7   :  { %v305_v23 = vpop.f32.mrf.mxu0 }
  0xc8   :  { %v112_v24 = vmax.f32 %v109_v22, 0.0 }
  0xca   :  { %339 = vmatmul.mubr.f32.vlgmr.msra.gmra.mxu1 %v112_v24 }
 0x18a   :  { %v202_v26 = vpop.f32.mrf.mxu1 }
 0x18b   :  { %v203_v27 = vadd.f32 %v278_v25, %v202_v26 }
 0x18c   :  { %v340_v28 = vpop.f32.mrf.mxu1 }
 0x18d   :  { %v206_v29 = vmul.f32 0.5, %v203_v27  ;;  %v211_v30 = vand.u32 2147483647, %v203_v27 }
 0x18f   :  { %347 = vtanh.f32 %v206_v29  ;;  %v212_v31 = vsub.f32 0.0, %v211_v30 }
 0x191   :  { %v213_v32 = vmul.f32 1.442695, %v212_v31 }
 0x193   :  { %349 = vpow2.f32 %v213_v32 }
 0x19c   :  { %v348_v33 = vpop.eup %347 }
 0x19d   :  { %v208_v34 = vmul.f32 0.5, %v348_v33 }
 0x19f   :  { %v209_v35 = vadd.f32 0.5, %v208_v34 }
 0x1a0   :  { %v350_v36 = vpop.eup %349 }
 0x1a1   :  { %v215_v37 = vadd.f32 1.0, %v350_v36  ;;  %233 = vst.msk [vmem:[#allocation4] sm:$0xff] %vm38_vm1, %v209_v35  ;;  %v218_v38 = vmul.f32 -0.5, %v350_v36 }
 0x1a3   :  { %351 = vlog2.f32 %v215_v37 }
 0x1a4   :  { %364 = shalt.err (!%p361_p4)
}
 0x1a5   :  { %254 = dma.vmem_to_hbm [thread:$0]  %s252_s3, 128, %s556_s7, [#allocation5]   ;;  %v219_v39 = vadd.f32 1.0, %v218_v38  ;;  %v221_v40 = vand.u32 2147483647, %v350_v36  ;;  %v210_v44 = vmax.f32 %v203_v27, 0.0 }
 0x1a6   :  { %s420_s23 = smov 112   ;;  %s421_s24 = smov [#allocation6]   ;;  %v225_v47 = vld [vmem:[%s554_s5] sm:$0xff] }
 0x1a7   :  { %v220_v43 = vmul.f32 %v350_v36, %v219_v39  ;;  %vm222_vm2 = vcmp.lt.f32.partialorder %v221_v40, 0.0004427343  ;;  %s261_s25 = sshll.u32 %s421_s24, 4  ;;  %s422_s7 = smov [#allocation2]   ;;  %s262_s25 = int_to_ptr.vmem [resolvable:$true] %s261_s25 }
 0x1a8   :  { %s241_s28 = sshll.u32 %s422_s7, 4  ;;  %s373_s29 = scalar_lea.vmem %s262_s25, 128  ;;  %s242_s28 = int_to_ptr.vmem [resolvable:$true] %s241_s28 }
 0x1a9   :  { %p374_p5 = scmp.ne.s32.totalorder %s262_s25, %s373_s29  ;;  %p378_p6 = scmp.lt.s32.totalorder %s262_s25, %s262_s25 }
 0x1aa   :  { %p379_p7 = scmp.lt.s32.totalorder %s373_s29, %s373_s29 }
 0x1ac   :  { %p380_p8 = por %p379_p7, %p378_p6 }
 0x1ae   :  { %p381_p9 = pnand %p380_p8, %p374_p5 }
 0x1b0   :  { %v352_v41 = vpop.eup %351 }
 0x1b1   :  { %v217_v42 = vmul.f32 0.6931472, %v352_v41 }
 0x1b3   :  { %v223_v45 = vsel %vm222_vm2, %v220_v43, %v217_v42 }
 0x1b4   :  { %v224_v46 = vadd.f32 %v223_v45, %v210_v44 }
 0x1b6   :  { %227 = vrot.lane.b32.xlu0 %v224_v46, %s420_s23 }
 0x228   :  { %v228_v48 = vpop.permute.xlu0 %227 }
 0x229   :  { %v230_v49 = vmul.f32 %v228_v48, %v225_v47  ;;  %234 = vst.msk [vmem:[#allocation6] sm:$0xff] %vm38_vm1, %v228_v48 }
 0x22a   :  { %384 = shalt.err (!%p381_p9)
}
 0x22b   :  { %264 = dma.vmem_to_hbm [thread:$0]  %s262_s25, 128, %s557_s8, [#allocation5]   ;;  %v231_v50 = vadd.f32 %v230_v49, %v209_v35 }
 0x22c   :  { %s393_s5 = scalar_lea.vmem %s242_s28, 128  ;;  %p398_p11 = scmp.lt.s32.totalorder %s242_s28, %s242_s28 }
 0x22d   :  { %232 = vst.msk [vmem:[#allocation2] sm:$0xff] %vm38_vm1, %v231_v50  ;;  %p394_p10 = scmp.ne.s32.totalorder %s242_s28, %s393_s5  ;;  %p399_p12 = scmp.lt.s32.totalorder %s393_s5, %s393_s5 }
 0x22f   :  { %p400_p13 = por %p399_p12, %p398_p11 }
 0x231   :  { %p401_p0 = pnand %p400_p13, %p394_p10 }
 0x233   :  { %404 = shalt.err (!%p401_p0)
}
 0x234   :  { %244 = dma.vmem_to_hbm [thread:$0]  %s242_s28, 128, %s555_s6, [#allocation3]  }
 0x235   :  { %413 = dma.done.wait [#allocation3], 128  }
 0x236   :  { %414 = vsyncadd [#allocation3], 4294967168 }
 0x237   :  { %415 = dma.done.wait [#allocation5], 256  }
 0x238   :  { %416 = vsyncadd [#allocation5], 4294967040 }
 0x239   :  { %274 = vsyncpa [#allocation3], 1 }
 0x23a   :  { %275 = vsyncpa [#allocation5], 1 }

</bundles_post_ra>
